<compile_context>
chip_gen: v7x
topology: tpu7x:2x2x1
jax: 0.10.0
libtpu: 0.0.40
codegen_flags: <defaults>
</compile_context>

<pallas_src>
import math

import jax
import jax.numpy as jnp
from jax.experimental import pallas as pl
from jax.experimental.pallas import tpu as pltpu


_INV_SQRT2 = 0.7071067811865476  # 1/sqrt(2): constant multiply instead of divide


def _gelu_exact(x):
    # PyTorch nn.GELU() default ("none"): 0.5 * x * (1 + erf(x / sqrt(2)))
    return 0.5 * x * (1.0 + jax.lax.erf(x * _INV_SQRT2))


def _gelu_tanh(x):
    # tanh approximation: runs on the EUP slot instead of a long VALU erf poly.
    return jax.nn.gelu(x, approximate=True)


def _round_up(v, m):
    return ((v + m - 1) // m) * m


def _vmem_budget_bytes():
    """Generation-aware usable-VMEM budget (physical capacity - headroom)."""
    try:
        cap = int(pltpu.get_tpu_info().vmem_capacity_bytes)
    except Exception:
        cap = 64 << 20  # conservative fallback: v7x per-TensorCore VMEM
    return max(cap - (16 << 20), 32 << 20)


def _need_bytes(tm, n, th, op, in_bytes, out_bytes, n_h, single_buffer_consts=True):
    """Per-grid-step VMEM footprint estimate."""
    buf_w = 1 if (n_h == 1 and single_buffer_consts) else 2
    return (2 * tm * n * in_bytes                      # x tile (double-buffered)
            + buf_w * (n * th + th * op) * in_bytes    # weight chunks
            + buf_w * th * 4 + op * 4                  # biases (f32)
            + 2 * tm * op * out_bytes                  # output tile
            + tm * op * 4                              # f32 accumulator scratch
            + tm * th * 4 + tm * op * 4)               # in-kernel f32 temps


def _make_kernel(approximate_gelu):
    gelu = _gelu_tanh if approximate_gelu else _gelu_exact

    def kernel(x_ref, w1_ref, b1_ref, w2_ref, b2_ref, o_ref, acc_ref):
        # x_ref : (TM, N)   compute dtype
        # w1_ref: (N, TH)   compute dtype (H chunk)
        # b1_ref: (1, TH)   f32
        # w2_ref: (TH, Op)  compute dtype (H chunk)
        # b2_ref: (1, Op)   f32
        # o_ref : (TM, Op)  out dtype, lane-dense
        # acc_ref: (TM, Op) f32 scratch, resident across the H axis
        h_idx = pl.program_id(1)

        @pl.when(h_idx == 0)
        def _():
            acc_ref[...] = jnp.zeros_like(acc_ref)

        # fc1 chunk + GELU: MXU matmul with f32 accumulation; GELU stays f32.
        h = jnp.dot(x_ref[...], w1_ref[...],
                    preferred_element_type=jnp.float32) + b1_ref[...]
        h = gelu(h).astype(w2_ref.dtype)
        # fc2 chunk accumulated into the resident f32 scratch.
        acc_ref[...] += jnp.dot(h, w2_ref[...],
                                preferred_element_type=jnp.float32)

        @pl.when(h_idx == pl.num_programs(1) - 1)
        def _():
            y = acc_ref[...] + b2_ref[...]
            o_ref[...] = gelu(y).astype(o_ref.dtype)

    return kernel


def token2spatial_forward(x, w1, b1, w2, b2, new_height_width, *,
                          compute_dtype=jnp.float32, out_dtype=jnp.float32,
                          approximate_gelu=False, max_th=None,
                          force_pallas=False):
    """
    x  : (B, ltoken_num, ltoken_dim)  -- PyTorch input convention
    w1 : (hidden, ltoken_num)         -- fc1.weight (PyTorch layout)
    b1 : (hidden,)
    w2 : (out_rep, hidden)            -- fc2.weight (PyTorch layout)
    b2 : (out_rep,)
    returns: (B, ltoken_dim, new_height_width, new_height_width) in out_dtype

    compute_dtype=bfloat16 is recommended on ALL TPU generations (v5e's MXU is
    bf16-native; only the VPU/EUP math must stay f32, which it does here).
    """
    B, N, D = x.shape
    H = w1.shape[0]
    O = w2.shape[0]
    assert O == new_height_width ** 2

    gelu = _gelu_tanh if approximate_gelu else _gelu_exact
    M = B * D

    # Tiny-problem fallback: pallas_call launch overhead would dominate.
    if not force_pallas and (M < 128 and H < 128 and O < 128):
        xt = jnp.transpose(x, (0, 2, 1))
        h = gelu(jnp.einsum("bdn,hn->bdh", xt, w1) + b1)
        y = gelu(jnp.einsum("bdh,oh->bdo", h, w2) + b2)
        return y.astype(out_dtype).reshape(B, D, new_height_width, new_height_width)

    in_bytes = jnp.dtype(compute_dtype).itemsize
    out_bytes = jnp.dtype(out_dtype).itemsize
    budget = _vmem_budget_bytes()

    # ---- tiling ----
    # TM = 512 on all generations, VMEM permitting (mem/overhead bound regime).
    TM = min(512, _round_up(M, 8))
    Hp = _round_up(H, 128)
    Op = _round_up(O, 128)

    TH = Hp
    if max_th is not None:
        TH = min(Hp, max(128, (int(max_th) // 128) * 128))
        if Hp % TH:
            TH = 128
    # Shrink the H chunk (stream weights over the inner reduction axis) and
    # then TM until the per-step footprint fits the VMEM budget.
    while TH > 128 and _need_bytes(TM, N, TH, Op, in_bytes, out_bytes, Hp // TH) > budget:
        nxt = max(128, ((TH // 2) // 128) * 128)
        TH = nxt if Hp % nxt == 0 else 128
    while TM > 128 and _need_bytes(TM, N, TH, Op, in_bytes, out_bytes, Hp // TH) > budget:
        TM = max(128, TM // 2)
    Mp = _round_up(M, TM)
    n_h = Hp // TH
    n_m = Mp // TM

    # ---- layout glue (single fused XLA copy over the smallest operand) ----
    xm = jnp.transpose(x, (0, 2, 1)).reshape(M, N).astype(compute_dtype)
    if Mp != M:
        xm = jnp.pad(xm, ((0, Mp - M), (0, 0)))
    # Lane-dense (multiple-of-128) zero-padded weights / biases (exact: padded
    # hidden columns give gelu(0)=0 against zero w2 rows; padded O columns are
    # sliced away).
    w1p = jnp.pad(jnp.transpose(w1).astype(compute_dtype), ((0, 0), (0, Hp - H)))
    w2p = jnp.pad(jnp.transpose(w2).astype(compute_dtype), ((0, Hp - H), (0, Op - O)))
    b1p = jnp.pad(b1.astype(jnp.float32), (0, Hp - H)).reshape(1, Hp)
    b2p = jnp.pad(b2.astype(jnp.float32), (0, Op - O)).reshape(1, Op)

    kernel = _make_kernel(approximate_gelu)

    def run(single_buffer_consts):
        need = _need_bytes(TM, N, TH, Op, in_bytes, out_bytes, n_h,
                           single_buffer_consts)
        vmem_limit = int(min(max(need + (8 << 20), 32 << 20), budget))
        # Constant-index blocks gain nothing from double-buffering; request a
        # single buffer to halve their resident VMEM.
        w_mode = ({"pipeline_mode": pl.Buffered(1)}
                  if (single_buffer_consts and n_h == 1) else {})
        b2_mode = ({"pipeline_mode": pl.Buffered(1)}
                   if single_buffer_consts else {})
        return pl.pallas_call(
            kernel,
            out_shape=jax.ShapeDtypeStruct((Mp, Op), out_dtype),
            grid_spec=pltpu.PrefetchScalarGridSpec(
                num_scalar_prefetch=0,
                grid=(n_m, n_h),
                in_specs=[
                    pl.BlockSpec((TM, N), lambda i, h: (i, 0)),          # x tile walks M
                    pl.BlockSpec((N, TH), lambda i, h: (0, h), **w_mode),  # w1 chunk
                    pl.BlockSpec((1, TH), lambda i, h: (0, h), **w_mode),  # b1 chunk
                    pl.BlockSpec((TH, Op), lambda i, h: (h, 0), **w_mode),  # w2 chunk
                    pl.BlockSpec((1, Op), lambda i, h: (0, 0), **b2_mode),  # b2 const
                ],
                out_specs=pl.BlockSpec((TM, Op), lambda i, h: (i, 0)),   # lane-dense
                scratch_shapes=[pltpu.VMEM((TM, Op), jnp.float32)],
            ),
            compiler_params=pltpu.CompilerParams(
                # M tiles independent -> "parallel" (megacore on v7x);
                # H axis accumulates into scratch -> "arbitrary".
                dimension_semantics=("parallel", "arbitrary"),
                vmem_limit_bytes=vmem_limit),
        )(xm, w1p, b1p, w2p, b2p)

    try:
        out = run(single_buffer_consts=True)
    except Exception:
        # If this JAX build rejects pl.Buffered(1), retry with default
        # double-buffering (identical numerics, slightly more VMEM).
        out = run(single_buffer_consts=False)

    # Skip the un-pad slice (a full-output XLA copy) when nothing was padded.
    if Mp != M or Op != O:
        out = out[:M, :O]
    return out.reshape(B, D, new_height_width, new_height_width)


def init_params(key, ltoken_num, ltoken_dim, hidden_features, hw_size_3rd):
    """Deterministic parameter init mirroring PyTorch nn.Linear default
    (uniform in +/- 1/sqrt(fan_in))."""
    new_hw = hw_size_3rd // 2
    hidden = int(ltoken_dim * hidden_features)
    out_rep = new_hw ** 2

    k1, k2, k3, k4 = jax.random.split(key, 4)
    bound1 = 1.0 / math.sqrt(ltoken_num)
    bound2 = 1.0 / math.sqrt(hidden)
    w1 = jax.random.uniform(k1, (hidden, ltoken_num), jnp.float32, -bound1, bound1)
    b1 = jax.random.uniform(k2, (hidden,), jnp.float32, -bound1, bound1)
    w2 = jax.random.uniform(k3, (out_rep, hidden), jnp.float32, -bound2, bound2)
    b2 = jax.random.uniform(k4, (out_rep,), jnp.float32, -bound2, bound2)
    return (w1, b1, w2, b2), new_hw


def _reference(x, w1, b1, w2, b2, new_hw):
    # Pure-JAX reference of the PyTorch forward (f32, exact erf GELU).
    xt = jnp.transpose(x, (0, 2, 1))
    h = _gelu_exact(jnp.einsum("bdn,hn->bdh", xt, w1) + b1)
    y = _gelu_exact(jnp.einsum("bdh,oh->bdo", h, w2) + b2)
    B, D, _ = y.shape
    return y.reshape(B, D, new_hw, new_hw)


if __name__ == "__main__":
    # Small shapes consistent with the module.
    hw_size_3rd = 16       # -> new_height_width = 8, out_rep = 64
    ltoken_num = 8
    ltoken_dim = 4
    hidden_features = 8    # hidden = int(ltoken_dim * hidden_features) = 32
    lin_drop_prob = 0.0    # dropout is identity (eval / p=0.0)

    key = jax.random.PRNGKey(0)
    kx, kx2, kp, kp2 = jax.random.split(key, 4)

    (w1, b1, w2, b2), new_hw = init_params(
        kp, ltoken_num, ltoken_dim, hidden_features, hw_size_3rd)

    # --- module-sized demo (B=2): forces the Pallas path, f32 ---
    x = jax.random.normal(kx, (2, ltoken_num, ltoken_dim), jnp.float32)
    out = jax.block_until_ready(
        token2spatial_forward(x, w1, b1, w2, b2, new_hw, force_pallas=True))
    ref = _reference(x, w1, b1, w2, b2, new_hw)
    assert out.shape == (2, ltoken_dim, new_hw, new_hw), out.shape
    assert jnp.allclose(out, ref, atol=1e-5, rtol=1e-5), "mismatch (B=2, f32)"

    # --- bigger batch: multi-block flattened-M grid (M = 512*4 = 2048) ---
    xb = jax.random.normal(kx2, (512, ltoken_num, ltoken_dim), jnp.float32)
    outb = jax.block_until_ready(
        token2spatial_forward(xb, w1, b1, w2, b2, new_hw, force_pallas=True))
    refb = _reference(xb, w1, b1, w2, b2, new_hw)
    assert outb.shape == (512, ltoken_dim, new_hw, new_hw), outb.shape
    assert jnp.allclose(outb, refb, atol=1e-5, rtol=1e-5), "mismatch (B=512, f32)"

    # --- H-chunked inner reduction path (hidden = 256, TH forced to 128) ---
    (w1h, b1h, w2h, b2h), _ = init_params(
        kp2, ltoken_num, ltoken_dim, 64, hw_size_3rd)   # hidden = 256
    outh = jax.block_until_ready(
        token2spatial_forward(xb, w1h, b1h, w2h, b2h, new_hw,
                              force_pallas=True, max_th=128))
    refh = _reference(xb, w1h, b1h, w2h, b2h, new_hw)
    assert jnp.allclose(outh, refh, atol=1e-4, rtol=1e-4), "mismatch (H-chunked)"

    # --- bf16 MXU operands (recommended on all gens) + bf16 writeback ---
    outbf = jax.block_until_ready(
        token2spatial_forward(xb, w1, b1, w2, b2, new_hw, force_pallas=True,
                              compute_dtype=jnp.bfloat16,
                              out_dtype=jnp.bfloat16))
    assert jnp.allclose(outbf.astype(jnp.float32), refb, atol=1e-1), "mismatch (bf16)"

    # --- tanh-approximate GELU (EUP offload) path ---
    outg = jax.block_until_ready(
        token2spatial_forward(xb, w1, b1, w2, b2, new_hw, force_pallas=True,
                              approximate_gelu=True))
    assert jnp.allclose(outg, refb, atol=5e-2, rtol=5e-2), "mismatch (tanh GELU)"

    print("KERNEL_OK")
</pallas_src>

<mosaic_0001>
module attributes {stable_mosaic.version = 11 : i64} {
  func.func @kernel(%arg0: i32, %arg1: i32, %arg2: memref<8x8xf32, #tpu.memory_space<vmem>>, %arg3: memref<8x128xf32, #tpu.memory_space<vmem>>, %arg4: memref<1x128xf32, #tpu.memory_space<vmem>>, %arg5: memref<128x128xf32, #tpu.memory_space<vmem>>, %arg6: memref<1x128xf32, #tpu.memory_space<vmem>>, %arg7: memref<8x128xf32, #tpu.memory_space<vmem>>, %arg8: memref<8x128xf32, #tpu.memory_space<vmem>>) attributes {dimension_semantics = [#tpu.dimension_semantics<parallel>, #tpu.dimension_semantics<arbitrary>], iteration_bounds = array<i64: 1, 1>, scalar_prefetch = 0 : i64, scratch_operands = 1 : i64, tpu.core_type = #tpu.core_type<tc>, window_params = [{transform_indices = @transform_0, window_bounds = array<i64: 8, 8>}, {pipeline_mode = #tpu.pipeline_mode<synchronous>, transform_indices = @transform_1, window_bounds = array<i64: 8, 128>}, {pipeline_mode = #tpu.pipeline_mode<synchronous>, transform_indices = @transform_2, window_bounds = array<i64: 1, 128>}, {pipeline_mode = #tpu.pipeline_mode<synchronous>, transform_indices = @transform_3, window_bounds = array<i64: 128, 128>}, {pipeline_mode = #tpu.pipeline_mode<synchronous>, transform_indices = @transform_4, window_bounds = array<i64: 1, 128>}, {transform_indices = @transform_5, window_bounds = array<i64: 8, 128>}]} {
    %c0_i32 = arith.constant 0 : i32
    %0 = arith.cmpi eq, %arg1, %c0_i32 : i32
    %1 = arith.extui %0 : i1 to i32
    %c0_i32_0 = arith.constant 0 : i32
    %2 = arith.cmpi ne, %1, %c0_i32_0 : i32
    scf.if %2 {
      %cst_18 = arith.constant 0.000000e+00 : f32
      %25 = vector.broadcast %cst_18 : f32 to vector<8x128xf32>
      %c0_19 = arith.constant 0 : index
      %c0_20 = arith.constant 0 : index
      %26 = vector.load %arg8[%c0_19, %c0_20] : memref<8x128xf32, #tpu.memory_space<vmem>>, vector<8x128xf32>
      tpu.vector_store %arg8[%c0_19, %c0_20], %25 {strides = array<i32>} : memref<8x128xf32, #tpu.memory_space<vmem>>, vector<8x128xf32>,
    } else {
    }
    %c0 = arith.constant 0 : index
    %c0_1 = arith.constant 0 : index
    %3 = vector.load %arg2[%c0, %c0_1] : memref<8x8xf32, #tpu.memory_space<vmem>>, vector<8x8xf32>
    %c0_2 = arith.constant 0 : index
    %c0_3 = arith.constant 0 : index
    %4 = vector.load %arg3[%c0_2, %c0_3] : memref<8x128xf32, #tpu.memory_space<vmem>>, vector<8x128xf32>
    %cst = arith.constant dense<0.000000e+00> : vector<8x128xf32>
    %5 = tpu.matmul %3, %4, %cst {dimension_numbers = #tpu.dot_dimension_numbers<[1], [0], [0], [1], [0, 0, 1, 1], [], []>} : vector<8x8xf32>, vector<8x128xf32>, vector<8x128xf32> -> vector<8x128xf32>
    %c0_4 = arith.constant 0 : index
    %c0_5 = arith.constant 0 : index
    %6 = vector.load %arg4[%c0_4, %c0_5] : memref<1x128xf32, #tpu.memory_space<vmem>>, vector<1x128xf32>
    %7 = vector.broadcast %6 : vector<1x128xf32> to vector<8x128xf32>
    %8 = arith.addf %5, %7 : vector<8x128xf32>
    %cst_6 = arith.constant 5.000000e-01 : f32
    %9 = vector.broadcast %cst_6 : f32 to vector<8x128xf32>
    %10 = arith.mulf %9, %8 : vector<8x128xf32>
    %cst_7 = arith.constant 0.707106769 : f32
    %11 = vector.broadcast %cst_7 : f32 to vector<8x128xf32>
    %12 = arith.mulf %8, %11 : vector<8x128xf32>
    %13 = math.erf %12 : vector<8x128xf32>
    %cst_8 = arith.constant 1.000000e+00 : f32
    %14 = vector.broadcast %cst_8 : f32 to vector<8x128xf32>
    %15 = arith.addf %14, %13 : vector<8x128xf32>
    %16 = arith.mulf %10, %15 : vector<8x128xf32>
    %c0_9 = arith.constant 0 : index
    %c0_10 = arith.constant 0 : index
    %17 = vector.load %arg8[%c0_9, %c0_10] : memref<8x128xf32, #tpu.memory_space<vmem>>, vector<8x128xf32>
    %c0_11 = arith.constant 0 : index
    %c0_12 = arith.constant 0 : index
    %18 = vector.load %arg5[%c0_11, %c0_12] : memref<128x128xf32, #tpu.memory_space<vmem>>, vector<128x128xf32>
    %cst_13 = arith.constant dense<0.000000e+00> : vector<8x128xf32>
    %19 = tpu.matmul %16, %18, %cst_13 {dimension_numbers = #tpu.dot_dimension_numbers<[1], [0], [0], [1], [0, 0, 1, 1], [], []>} : vector<8x128xf32>, vector<128x128xf32>, vector<8x128xf32> -> vector<8x128xf32>
    %20 = arith.addf %17, %19 : vector<8x128xf32>
    %c0_14 = arith.constant 0 : index
    %c0_15 = arith.constant 0 : index
    %21 = vector.load %arg8[%c0_14, %c0_15] : memref<8x128xf32, #tpu.memory_space<vmem>>, vector<8x128xf32>
    tpu.vector_store %arg8[%c0_14, %c0_15], %20 {strides = array<i32>} : memref<8x128xf32, #tpu.memory_space<vmem>>, vector<8x128xf32>,
    %c0_i32_16 = arith.constant 0 : i32
    %22 = arith.cmpi eq, %arg1, %c0_i32_16 : i32
    %23 = arith.extui %22 : i1 to i32
    %c0_i32_17 = arith.constant 0 : i32
    %24 = arith.cmpi ne, %23, %c0_i32_17 : i32
    scf.if %24 {
      %c0_18 = arith.constant 0 : index
      %c0_19 = arith.constant 0 : index
      %25 = vector.load %arg8[%c0_18, %c0_19] : memref<8x128xf32, #tpu.memory_space<vmem>>, vector<8x128xf32>
      %c0_20 = arith.constant 0 : index
      %c0_21 = arith.constant 0 : index
      %26 = vector.load %arg6[%c0_20, %c0_21] : memref<1x128xf32, #tpu.memory_space<vmem>>, vector<1x128xf32>
      %27 = vector.broadcast %26 : vector<1x128xf32> to vector<8x128xf32>
      %28 = arith.addf %25, %27 : vector<8x128xf32>
      %cst_22 = arith.constant 5.000000e-01 : f32
      %29 = vector.broadcast %cst_22 : f32 to vector<8x128xf32>
      %30 = arith.mulf %29, %28 : vector<8x128xf32>
      %cst_23 = arith.constant 0.707106769 : f32
      %31 = vector.broadcast %cst_23 : f32 to vector<8x128xf32>
      %32 = arith.mulf %28, %31 : vector<8x128xf32>
      %33 = math.erf %32 : vector<8x128xf32>
      %cst_24 = arith.constant 1.000000e+00 : f32
      %34 = vector.broadcast %cst_24 : f32 to vector<8x128xf32>
      %35 = arith.addf %34, %33 : vector<8x128xf32>
      %36 = arith.mulf %30, %35 : vector<8x128xf32>
      %c0_25 = arith.constant 0 : index
      %c0_26 = arith.constant 0 : index
      %37 = vector.load %arg7[%c0_25, %c0_26] : memref<8x128xf32, #tpu.memory_space<vmem>>, vector<8x128xf32>
      tpu.vector_store %arg7[%c0_25, %c0_26], %36 {strides = array<i32>} : memref<8x128xf32, #tpu.memory_space<vmem>>, vector<8x128xf32>,
    } else {
    }
    return
  }
  func.func @transform_0(%arg0: i32, %arg1: i32) -> (i32, i32) {
    %c0_i32 = arith.constant 0 : i32
    %c0_i32_0 = arith.constant 0 : i32
    return %arg0, %c0_i32 : i32, i32
  }
  func.func @transform_1(%arg0: i32, %arg1: i32) -> (i32, i32) {
    %c0_i32 = arith.constant 0 : i32
    %c0_i32_0 = arith.constant 0 : i32
    return %c0_i32, %arg1 : i32, i32
  }
  func.func @transform_2(%arg0: i32, %arg1: i32) -> (i32, i32) {
    %c0_i32 = arith.constant 0 : i32
    %c0_i32_0 = arith.constant 0 : i32
    return %c0_i32, %arg1 : i32, i32
  }
  func.func @transform_3(%arg0: i32, %arg1: i32) -> (i32, i32) {
    %c0_i32 = arith.constant 0 : i32
    %c0_i32_0 = arith.constant 0 : i32
    return %arg1, %c0_i32 : i32, i32
  }
  func.func @transform_4(%arg0: i32, %arg1: i32) -> (i32, i32) {
    %c0_i32 = arith.constant 0 : i32
    %c0_i32_0 = arith.constant 0 : i32
    %c0_i32_1 = arith.constant 0 : i32
    return %c0_i32, %c0_i32_0 : i32, i32
  }
  func.func @transform_5(%arg0: i32, %arg1: i32) -> (i32, i32) {
    %c0_i32 = arith.constant 0 : i32
    %c0_i32_0 = arith.constant 0 : i32
    return %arg0, %c0_i32 : i32, i32
  }
}

module attributes {stable_mosaic.version = 11 : i64} {
  func.func @kernel(%arg0: i32, %arg1: i32, %arg2: memref<8x8xf32, #tpu.memory_space<vmem>>, %arg3: memref<8x128xf32, #tpu.memory_space<vmem>>, %arg4: memref<1x128xf32, #tpu.memory_space<vmem>>, %arg5: memref<128x128xf32, #tpu.memory_space<vmem>>, %arg6: memref<1x128xf32, #tpu.memory_space<vmem>>, %arg7: memref<8x128xf32, #tpu.memory_space<vmem>>, %arg8: memref<8x128xf32, #tpu.memory_space<vmem>>) attributes {dimension_semantics = [#tpu.dimension_semantics<parallel>, #tpu.dimension_semantics<arbitrary>], iteration_bounds = array<i64: 1, 1>, scalar_prefetch = 0 : i64, scratch_operands = 1 : i64, tpu.core_type = #tpu.core_type<tc>, window_params = [{transform_indices = @transform_0, window_bounds = array<i64: 8, 8>}, {transform_indices = @transform_1, window_bounds = array<i64: 8, 128>}, {transform_indices = @transform_2, window_bounds = array<i64: 1, 128>}, {transform_indices = @transform_3, window_bounds = array<i64: 128, 128>}, {pipeline_mode = #tpu.pipeline_mode<synchronous>, transform_indices = @transform_4, window_bounds = array<i64: 1, 128>}, {transform_indices = @transform_5, window_bounds = array<i64: 8, 128>}]} {
    %c0_i32 = arith.constant 0 : i32
    %0 = arith.cmpi eq, %arg1, %c0_i32 : i32
    %1 = arith.extui %0 : i1 to i32
    %c0_i32_0 = arith.constant 0 : i32
    %2 = arith.cmpi ne, %1, %c0_i32_0 : i32
    scf.if %2 {
      %cst_18 = arith.constant 0.000000e+00 : f32
      %25 = vector.broadcast %cst_18 : f32 to vector<8x128xf32>
      %c0_19 = arith.constant 0 : index
      %c0_20 = arith.constant 0 : index
      %26 = vector.load %arg8[%c0_19, %c0_20] : memref<8x128xf32, #tpu.memory_space<vmem>>, vector<8x128xf32>
      tpu.vector_store %arg8[%c0_19, %c0_20], %25 {strides = array<i32>} : memref<8x128xf32, #tpu.memory_space<vmem>>, vector<8x128xf32>,
    } else {
    }
    %c0 = arith.constant 0 : index
    %c0_1 = arith.constant 0 : index
    %3 = vector.load %arg2[%c0, %c0_1] : memref<8x8xf32, #tpu.memory_space<vmem>>, vector<8x8xf32>
    %c0_2 = arith.constant 0 : index
    %c0_3 = arith.constant 0 : index
    %4 = vector.load %arg3[%c0_2, %c0_3] : memref<8x128xf32, #tpu.memory_space<vmem>>, vector<8x128xf32>
    %cst = arith.constant dense<0.000000e+00> : vector<8x128xf32>
    %5 = tpu.matmul %3, %4, %cst {dimension_numbers = #tpu.dot_dimension_numbers<[1], [0], [0], [1], [0, 0, 1, 1], [], []>} : vector<8x8xf32>, vector<8x128xf32>, vector<8x128xf32> -> vector<8x128xf32>
    %c0_4 = arith.constant 0 : index
    %c0_5 = arith.constant 0 : index
    %6 = vector.load %arg4[%c0_4, %c0_5] : memref<1x128xf32, #tpu.memory_space<vmem>>, vector<1x128xf32>
    %7 = vector.broadcast %6 : vector<1x128xf32> to vector<8x128xf32>
    %8 = arith.addf %5, %7 : vector<8x128xf32>
    %cst_6 = arith.constant 5.000000e-01 : f32
    %9 = vector.broadcast %cst_6 : f32 to vector<8x128xf32>
    %10 = arith.mulf %9, %8 : vector<8x128xf32>
    %cst_7 = arith.constant 0.707106769 : f32
    %11 = vector.broadcast %cst_7 : f32 to vector<8x128xf32>
    %12 = arith.mulf %8, %11 : vector<8x128xf32>
    %13 = math.erf %12 : vector<8x128xf32>
    %cst_8 = arith.constant 1.000000e+00 : f32
    %14 = vector.broadcast %cst_8 : f32 to vector<8x128xf32>
    %15 = arith.addf %14, %13 : vector<8x128xf32>
    %16 = arith.mulf %10, %15 : vector<8x128xf32>
    %c0_9 = arith.constant 0 : index
    %c0_10 = arith.constant 0 : index
    %17 = vector.load %arg8[%c0_9, %c0_10] : memref<8x128xf32, #tpu.memory_space<vmem>>, vector<8x128xf32>
    %c0_11 = arith.constant 0 : index
    %c0_12 = arith.constant 0 : index
    %18 = vector.load %arg5[%c0_11, %c0_12] : memref<128x128xf32, #tpu.memory_space<vmem>>, vector<128x128xf32>
    %cst_13 = arith.constant dense<0.000000e+00> : vector<8x128xf32>
    %19 = tpu.matmul %16, %18, %cst_13 {dimension_numbers = #tpu.dot_dimension_numbers<[1], [0], [0], [1], [0, 0, 1, 1], [], []>} : vector<8x128xf32>, vector<128x128xf32>, vector<8x128xf32> -> vector<8x128xf32>
    %20 = arith.addf %17, %19 : vector<8x128xf32>
    %c0_14 = arith.constant 0 : index
    %c0_15 = arith.constant 0 : index
    %21 = vector.load %arg8[%c0_14, %c0_15] : memref<8x128xf32, #tpu.memory_space<vmem>>, vector<8x128xf32>
    tpu.vector_store %arg8[%c0_14, %c0_15], %20 {strides = array<i32>} : memref<8x128xf32, #tpu.memory_space<vmem>>, vector<8x128xf32>,
    %c0_i32_16 = arith.constant 0 : i32
    %22 = arith.cmpi eq, %arg1, %c0_i32_16 : i32
    %23 = arith.extui %22 : i1 to i32
    %c0_i32_17 = arith.constant 0 : i32
    %24 = arith.cmpi ne, %23, %c0_i32_17 : i32
    scf.if %24 {
      %c0_18 = arith.constant 0 : index
      %c0_19 = arith.constant 0 : index
      %25 = vector.load %arg8[%c0_18, %c0_19] : memref<8x128xf32, #tpu.memory_space<vmem>>, vector<8x128xf32>
      %c0_20 = arith.constant 0 : index
      %c0_21 = arith.constant 0 : index
      %26 = vector.load %arg6[%c0_20, %c0_21] : memref<1x128xf32, #tpu.memory_space<vmem>>, vector<1x128xf32>
      %27 = vector.broadcast %26 : vector<1x128xf32> to vector<8x128xf32>
      %28 = arith.addf %25, %27 : vector<8x128xf32>
      %cst_22 = arith.constant 5.000000e-01 : f32
      %29 = vector.broadcast %cst_22 : f32 to vector<8x128xf32>
      %30 = arith.mulf %29, %28 : vector<8x128xf32>
      %cst_23 = arith.constant 0.707106769 : f32
      %31 = vector.broadcast %cst_23 : f32 to vector<8x128xf32>
      %32 = arith.mulf %28, %31 : vector<8x128xf32>
      %33 = math.erf %32 : vector<8x128xf32>
      %cst_24 = arith.constant 1.000000e+00 : f32
      %34 = vector.broadcast %cst_24 : f32 to vector<8x128xf32>
      %35 = arith.addf %34, %33 : vector<8x128xf32>
      %36 = arith.mulf %30, %35 : vector<8x128xf32>
      %c0_25 = arith.constant 0 : index
      %c0_26 = arith.constant 0 : index
      %37 = vector.load %arg7[%c0_25, %c0_26] : memref<8x128xf32, #tpu.memory_space<vmem>>, vector<8x128xf32>
      tpu.vector_store %arg7[%c0_25, %c0_26], %36 {strides = array<i32>} : memref<8x128xf32, #tpu.memory_space<vmem>>, vector<8x128xf32>,
    } else {
    }
    return
  }
  func.func @transform_0(%arg0: i32, %arg1: i32) -> (i32, i32) {
    %c0_i32 = arith.constant 0 : i32
    %c0_i32_0 = arith.constant 0 : i32
    return %arg0, %c0_i32 : i32, i32
  }
  func.func @transform_1(%arg0: i32, %arg1: i32) -> (i32, i32) {
    %c0_i32 = arith.constant 0 : i32
    %c0_i32_0 = arith.constant 0 : i32
    return %c0_i32, %arg1 : i32, i32
  }
  func.func @transform_2(%arg0: i32, %arg1: i32) -> (i32, i32) {
    %c0_i32 = arith.constant 0 : i32
    %c0_i32_0 = arith.constant 0 : i32
    return %c0_i32, %arg1 : i32, i32
  }
  func.func @transform_3(%arg0: i32, %arg1: i32) -> (i32, i32) {
    %c0_i32 = arith.constant 0 : i32
    %c0_i32_0 = arith.constant 0 : i32
    return %arg1, %c0_i32 : i32, i32
  }
  func.func @transform_4(%arg0: i32, %arg1: i32) -> (i32, i32) {
    %c0_i32 = arith.constant 0 : i32
    %c0_i32_0 = arith.constant 0 : i32
    %c0_i32_1 = arith.constant 0 : i32
    return %c0_i32, %c0_i32_0 : i32, i32
  }
  func.func @transform_5(%arg0: i32, %arg1: i32) -> (i32, i32) {
    %c0_i32 = arith.constant 0 : i32
    %c0_i32_0 = arith.constant 0 : i32
    return %arg0, %c0_i32 : i32, i32
  }
}

</mosaic_0001>

<bundles_post_ra>
// kernel: tpu_custom_call.1
= control target key start
LH: loop header
LB: loop body
LE: loop exit
PB: predicated region body
PF: predicated region fallthrough
CT: control target
= control target key end

     0   :  { %10 = vsyncpa [#allocation4], 0  ;;  %s560_s0 = inlined_call_operand.hbm [shape: f32[8,8], index: 0, kind: input, shape index: {}]   ;;  %s561_s1 = inlined_call_operand.hbm [shape: f32[8,128], index: 1, kind: input, shape index: {}]   ;;  %s562_s2 = inlined_call_operand.vmem [shape: f32[1,128], index: 2, kind: input, shape index: {}]   ;;  %s563_s3 = inlined_call_operand.hbm [shape: f32[128,128], index: 3, kind: input, shape index: {}]   ;;  %s564_s4 = inlined_call_operand.vmem [shape: f32[1,128], index: 4, kind: input, shape index: {}]   ;;  %s565_s5 = inlined_call_operand.hbm [shape: f32[8,128], index: 5, kind: output, shape index: {}]  }
   0x1   :  { %11 = vsyncpa [#allocation7], 0 }
   0x2   :  { %12 = vsyncpa [#allocation5], 0  ;;  %s467_s18 = smov [#allocation6]   ;;  %s468_s20 = smov [#allocation3]  }
   0x3   :  { %s29_s19 = sshll.u32 %s467_s18, 4  ;;  %s19_s21 = sshll.u32 %s468_s20, 4  ;;  %s30_s19 = int_to_ptr.vmem [resolvable:$true] %s29_s19  ;;  %s20_s21 = int_to_ptr.vmem [resolvable:$true] %s19_s21 }
   0x4   :  { %s373_s24 = scalar_lea.hbm %s561_s1, 128 }
   0x5   :  { %p374_p0 = scmp.ne.s32.totalorder %s561_s1, %s373_s24  ;;  %p377_p1 = scmp.lt.u32.totalorder %s373_s24, %s561_s1 }
   0x7   :  { %p379_p2 = pnand %p377_p1, %p374_p0 }
   0x9   :  { %382 = shalt.err (!%p379_p2)
}
   0xa   :  { %s383_s29 = scalar_lea.vmem %s30_s19, 128  ;;  %p388_p4 = scmp.lt.s32.totalorder %s30_s19, %s30_s19 }
   0xb   :  { %p384_p3 = scmp.ne.s32.totalorder %s30_s19, %s383_s29  ;;  %p389_p5 = scmp.lt.s32.totalorder %s383_s29, %s383_s29 }
   0xd   :  { %p390_p6 = por %p389_p5, %p388_p4 }
   0xf   :  { %p391_p7 = pnand %p390_p6, %p384_p3 }
  0x11   :  { %394 = shalt.err (!%p391_p7)
}
  0x12   :  { %32 = dma.hbm_to_vmem [thread:$0]  %s561_s1, 128, %s30_s19, [#allocation7]  }
  0x13   :  { %s395_s9 = scalar_lea.hbm %s560_s0, 128 }
  0x14   :  { %p396_p8 = scmp.ne.s32.totalorder %s560_s0, %s395_s9  ;;  %p399_p9 = scmp.lt.u32.totalorder %s395_s9, %s560_s0 }
  0x16   :  { %p401_p10 = pnand %p399_p9, %p396_p8 }
  0x18   :  { %404 = shalt.err (!%p401_p10)
}
  0x19   :  { %s405_s14 = scalar_lea.vmem %s20_s21, 128  ;;  %p410_p12 = scmp.lt.s32.totalorder %s20_s21, %s20_s21 }
  0x1a   :  { %p406_p11 = scmp.ne.s32.totalorder %s20_s21, %s405_s14  ;;  %p411_p13 = scmp.lt.s32.totalorder %s405_s14, %s405_s14 }
  0x1c   :  { %p412_p0 = por %p411_p13, %p410_p12 }
  0x1e   :  { %p413_p1 = pnand %p412_p0, %p406_p11 }
  0x20   :  { %416 = shalt.err (!%p413_p1)
}
  0x21   :  { %22 = dma.hbm_to_vmem [thread:$0]  %s560_s0, 128, %s20_s21, [#allocation4]  }
  0x22   :  { %s469_s16 = smov [#allocation8]   ;;  %s417_s20 = scalar_lea.hbm %s563_s3, 2048 }
  0x23   :  { %s40_s17 = sshll.u32 %s469_s16, 4  ;;  %p418_p2 = scmp.ne.s32.totalorder %s563_s3, %s417_s20  ;;  %s41_s17 = int_to_ptr.vmem [resolvable:$true] %s40_s17 }
  0x24   :  { %p421_p3 = scmp.lt.u32.totalorder %s417_s20, %s563_s3 }
  0x26   :  { %p423_p4 = pnand %p421_p3, %p418_p2 }
  0x28   :  { %426 = shalt.err (!%p423_p4)
}
  0x29   :  { %s427_s26 = scalar_lea.vmem %s41_s17, 2048  ;;  %p432_p6 = scmp.lt.s32.totalorder %s41_s17, %s41_s17 }
  0x2a   :  { %p428_p5 = scmp.ne.s32.totalorder %s41_s17, %s427_s26  ;;  %p433_p7 = scmp.lt.s32.totalorder %s427_s26, %s427_s26 }
  0x2c   :  { %p434_p8 = por %p433_p7, %p432_p6 }
  0x2e   :  { %p435_p9 = pnand %p434_p8, %p428_p5 }
  0x30   :  { %438 = shalt.err (!%p435_p9)
}
  0x31   :  { %s470_s0 = smov 128   ;;  %s471_s21 = smov 8  }
  0x32   :  { %46 = dma.hbm_to_vmem [thread:$0]  %s563_s3, 2048, %s41_s17, [#allocation7], %s470_s0, %s470_s0, %s471_s21  }
  0x33   :  { %461 = dma.done.wait [#allocation4], 128  }
  0x34   :  { %462 = vsyncadd [#allocation4], 4294967168 }
  0x35   :  { %463 = dma.done.wait [#allocation7], 2176  }
  0x36   :  { %464 = vsyncadd [#allocation7], 4294965120  ;;  %v472_v0 = vmov 0.0   ;;  %vm473_vm0 = vmmov 0   ;;  %v474_v1 = vmov 0.0|0.0   ;;  %vm72_vm1 = vcmask 64512  }
  0x37   :  { %296 = vmatprep.subr.mxu0 %v472_v0  ;;  %298 = vmatprep.mubr.msk.f32.mxu0 %vm473_vm0, %v472_v0  ;;  %v64_v2 = vld [vmem:[#allocation6] sm:$0xff]  ;;  %v63_v3 = vld [vmem:[#allocation3] sm:$0xff]  ;;  %v152_v4 = vld [vmem:[#allocation8] sm:$0xff] }
  0x38   :  { %336 = vmatprep.subr.bf16.mxu1 %v474_v1  ;;  %333 = vmatprep.mubr.msk.f32.mxu1 %vm473_vm0, %v472_v0  ;;  %v153_v5 = vld [vmem:[#allocation8 + $0x8] sm:$0xff]  ;;  %v154_v6 = vld [vmem:[#allocation8 + $0x10] sm:$0xff]  ;;  %v155_v7 = vld [vmem:[#allocation8 + $0x18] sm:$0xff] }
  0x39   :  { %297 = vmatpush3.msra.mxu0 %v64_v2  ;;  %v337_v8 = vpack.c.bf16 %v153_v5, %v152_v4  ;;  %v340_v9 = vpack.c.bf16 %v155_v7, %v154_v6  ;;  %v156_v10 = vld [vmem:[#allocation8 + $0x20] sm:$0xff]  ;;  %v157_v11 = vld [vmem:[#allocation8 + $0x28] sm:$0xff]  ;;  %v158_v13 = vld [vmem:[#allocation8 + $0x30] sm:$0xff] }
  0x3a   :  { %299 = vmatmul.mubr.msk.f32.vlgmr.msra.gmra.mrb[0].mxu0 %vm72_vm1, %v63_v3  ;;  %v343_v12 = vpack.c.bf16 %v157_v11, %v156_v10  ;;  %v159_v14 = vld [vmem:[#allocation8 + $0x38] sm:$0xff]  ;;  %v160_v16 = vld [vmem:[#allocation8 + $0x40] sm:$0xff]  ;;  %v161_v17 = vld [vmem:[#allocation8 + $0x48] sm:$0xff] }
  0x3b   :  { %338 = vmatpush3.bf16.msra.mxu1 %v337_v8  ;;  %v346_v15 = vpack.c.bf16 %v159_v14, %v158_v13  ;;  %v349_v18 = vpack.c.bf16 %v161_v17, %v160_v16  ;;  %v162_v19 = vld [vmem:[#allocation8 + $0x50] sm:$0xff]  ;;  %v163_v20 = vld [vmem:[#allocation8 + $0x58] sm:$0xff]  ;;  %v164_v22 = vld [vmem:[#allocation8 + $0x60] sm:$0xff] }
  0x3c   :  { %339 = vmatprep.subr.bf16.mxu1 %v474_v1  ;;  %v352_v21 = vpack.c.bf16 %v163_v20, %v162_v19  ;;  %v165_v23 = vld [vmem:[#allocation8 + $0x68] sm:$0xff]  ;;  %v166_v25 = vld [vmem:[#allocation8 + $0x70] sm:$0xff]  ;;  %v167_v26 = vld [vmem:[#allocation8 + $0x78] sm:$0xff] }
  0x3d   :  { %v355_v24 = vpack.c.bf16 %v165_v23, %v164_v22  ;;  %v358_v27 = vpack.c.bf16 %v167_v26, %v166_v25  ;;  %v274_v28 = vld [vmem:[%s562_s2] ss:$0 sm:$0xff]  ;;  %s475_s2 = smov [#allocation9]  }
  0x3e   :  { %v276_v37 = vld [vmem:[%s564_s4] ss:$0 sm:$0xff]  ;;  %s264_s7 = sshll.u32 %s475_s2, 4  ;;  %s265_s7 = int_to_ptr.vmem [resolvable:$true] %s264_s7 }
  0x3f   :  { %341 = vmatpush3.bf16.msra.mxu1 %v340_v9  ;;  %s439_s8 = scalar_lea.vmem %s265_s7, 128  ;;  %p444_p11 = scmp.lt.s32.totalorder %s265_s7, %s265_s7 }
  0x40   :  { %342 = vmatprep.subr.bf16.mxu1 %v474_v1  ;;  %p440_p10 = scmp.ne.s32.totalorder %s265_s7, %s439_s8  ;;  %p445_p12 = scmp.lt.s32.totalorder %s439_s8, %s439_s8 }
  0x42   :  { %p446_p13 = por %p445_p12, %p444_p11 }
  0x43   :  { %344 = vmatpush3.bf16.msra.mxu1 %v343_v12 }
  0x44   :  { %345 = vmatprep.subr.bf16.mxu1 %v474_v1  ;;  %p447_p0 = pnand %p446_p13, %p440_p10 }
  0x47   :  { %347 = vmatpush3.bf16.msra.mxu1 %v346_v15 }
  0x48   :  { %348 = vmatprep.subr.bf16.mxu1 %v474_v1 }
  0x4b   :  { %350 = vmatpush3.bf16.msra.mxu1 %v349_v18 }
  0x4c   :  { %351 = vmatprep.subr.bf16.mxu1 %v474_v1 }
  0x4f   :  { %353 = vmatpush3.bf16.msra.mxu1 %v352_v21 }
  0x50   :  { %354 = vmatprep.subr.bf16.mxu1 %v474_v1 }
  0x53   :  { %356 = vmatpush3.bf16.msra.mxu1 %v355_v24 }
  0x54   :  { %357 = vmatprep.subr.bf16.mxu1 %v474_v1 }
  0x57   :  { %359 = vmatpush3.bf16.msra.mxu1 %v358_v27 }
 0x10d   :  { %v142_v29 = vpop.f32.mrb[0].mxu0 }
 0x10e   :  { %v143_v30 = vadd.f32 %v274_v28, %v142_v29  ;;  %v300_v31 = vpop.f32.mrb[1].mxu0 }
 0x110   :  { %v147_v32 = vmul.f32 0.70710677, %v143_v30  ;;  %v146_v34 = vmul.f32 0.5, %v143_v30 }
 0x112   :  { %369 = verf.f32 %v147_v32 }
 0x11c   :  { %v370_v33 = vpop.eup %369 }
 0x11d   :  { %v149_v35 = vadd.f32 1.0, %v370_v33 }
 0x11f   :  { %v150_v36 = vmul.f32 %v149_v35, %v146_v34 }
 0x121   :  { %334 = vmatmul.mubr.f32.vlgmr.msra.gmra.mrb[0].mxu1 %v150_v36 }
 0x1f4   :  { %v234_v38 = vpop.f32.mrb[0].mxu1 }
 0x1f5   :  { %v251_v39 = vadd.f32 %v276_v37, %v234_v38  ;;  %v335_v40 = vpop.f32.mrb[1].mxu1 }
 0x1f7   :  { %v253_v41 = vmul.f32 0.70710677, %v251_v39  ;;  %v252_v43 = vmul.f32 0.5, %v251_v39 }
 0x1f9   :  { %371 = verf.f32 %v253_v41 }
 0x203   :  { %v372_v42 = vpop.eup %371 }
 0x204   :  { %v255_v44 = vadd.f32 1.0, %v372_v42 }
 0x206   :  { %v256_v45 = vmul.f32 %v255_v44, %v252_v43 }
 0x208   :  { %257 = vst [vmem:[#allocation9] sm:$0xff] %v256_v45 }
 0x209   :  { %450 = shalt.err (!%p447_p0)
}
 0x20a   :  { %s451_s10 = scalar_lea.hbm %s565_s5, 128 }
 0x20b   :  { %p452_p1 = scmp.ne.s32.totalorder %s565_s5, %s451_s10  ;;  %p455_p2 = scmp.lt.u32.totalorder %s451_s10, %s565_s5 }
 0x20d   :  { %p457_p3 = pnand %p455_p2, %p452_p1 }
 0x20f   :  { %460 = shalt.err (!%p457_p3)
}
 0x210   :  { %267 = dma.vmem_to_hbm [thread:$0]  %s265_s7, 128, %s565_s5, [#allocation5]  }
 0x211   :  { %465 = dma.done.wait [#allocation5], 128  }
 0x212   :  { %466 = vsyncadd [#allocation5], 4294967168 }
 0x213   :  { %271 = vsyncpa [#allocation4], 1 }
 0x214   :  { %272 = vsyncpa [#allocation7], 1 }
 0x215   :  { %273 = vsyncpa [#allocation5], 1 }

// kernel: tpu_custom_call.1
= control target key start
LH: loop header
LB: loop body
LE: loop exit
PB: predicated region body
PF: predicated region fallthrough
CT: control target
= control target key end

     0   :  { %10 = vsyncpa [#allocation4], 0  ;;  %s560_s0 = inlined_call_operand.hbm [shape: f32[8,8], index: 0, kind: input, shape index: {}]   ;;  %s561_s1 = inlined_call_operand.hbm [shape: f32[8,128], index: 1, kind: input, shape index: {}]   ;;  %s562_s2 = inlined_call_operand.vmem [shape: f32[1,128], index: 2, kind: input, shape index: {}]   ;;  %s563_s3 = inlined_call_operand.hbm [shape: f32[128,128], index: 3, kind: input, shape index: {}]   ;;  %s564_s4 = inlined_call_operand.vmem [shape: f32[1,128], index: 4, kind: input, shape index: {}]   ;;  %s565_s5 = inlined_call_operand.hbm [shape: f32[8,128], index: 5, kind: output, shape index: {}]  }
   0x1   :  { %11 = vsyncpa [#allocation7], 0 }
   0x2   :  { %12 = vsyncpa [#allocation5], 0  ;;  %s467_s18 = smov [#allocation6]   ;;  %s468_s20 = smov [#allocation3]  }
   0x3   :  { %s29_s19 = sshll.u32 %s467_s18, 4  ;;  %s19_s21 = sshll.u32 %s468_s20, 4  ;;  %s30_s19 = int_to_ptr.vmem [resolvable:$true] %s29_s19  ;;  %s20_s21 = int_to_ptr.vmem [resolvable:$true] %s19_s21 }
   0x4   :  { %s373_s24 = scalar_lea.hbm %s561_s1, 128 }
   0x5   :  { %p374_p0 = scmp.ne.s32.totalorder %s561_s1, %s373_s24  ;;  %p377_p1 = scmp.lt.u32.totalorder %s373_s24, %s561_s1 }
   0x7   :  { %p379_p2 = pnand %p377_p1, %p374_p0 }
   0x9   :  { %382 = shalt.err (!%p379_p2)
}
   0xa   :  { %s383_s29 = scalar_lea.vmem %s30_s19, 128  ;;  %p388_p4 = scmp.lt.s32.totalorder %s30_s19, %s30_s19 }
   0xb   :  { %p384_p3 = scmp.ne.s32.totalorder %s30_s19, %s383_s29  ;;  %p389_p5 = scmp.lt.s32.totalorder %s383_s29, %s383_s29 }
   0xd   :  { %p390_p6 = por %p389_p5, %p388_p4 }
   0xf   :  { %p391_p7 = pnand %p390_p6, %p384_p3 }
  0x11   :  { %394 = shalt.err (!%p391_p7)
}
  0x12   :  { %32 = dma.hbm_to_vmem [thread:$0]  %s561_s1, 128, %s30_s19, [#allocation7]  }
  0x13   :  { %s395_s9 = scalar_lea.hbm %s560_s0, 128 }
  0x14   :  { %p396_p8 = scmp.ne.s32.totalorder %s560_s0, %s395_s9  ;;  %p399_p9 = scmp.lt.u32.totalorder %s395_s9, %s560_s0 }
  0x16   :  { %p401_p10 = pnand %p399_p9, %p396_p8 }
  0x18   :  { %404 = shalt.err (!%p401_p10)
}
  0x19   :  { %s405_s14 = scalar_lea.vmem %s20_s21, 128  ;;  %p410_p12 = scmp.lt.s32.totalorder %s20_s21, %s20_s21 }
  0x1a   :  { %p406_p11 = scmp.ne.s32.totalorder %s20_s21, %s405_s14  ;;  %p411_p13 = scmp.lt.s32.totalorder %s405_s14, %s405_s14 }
  0x1c   :  { %p412_p0 = por %p411_p13, %p410_p12 }
  0x1e   :  { %p413_p1 = pnand %p412_p0, %p406_p11 }
  0x20   :  { %416 = shalt.err (!%p413_p1)
}
  0x21   :  { %22 = dma.hbm_to_vmem [thread:$0]  %s560_s0, 128, %s20_s21, [#allocation4]  }
  0x22   :  { %s469_s16 = smov [#allocation8]   ;;  %s417_s20 = scalar_lea.hbm %s563_s3, 2048 }
  0x23   :  { %s40_s17 = sshll.u32 %s469_s16, 4  ;;  %p418_p2 = scmp.ne.s32.totalorder %s563_s3, %s417_s20  ;;  %s41_s17 = int_to_ptr.vmem [resolvable:$true] %s40_s17 }
  0x24   :  { %p421_p3 = scmp.lt.u32.totalorder %s417_s20, %s563_s3 }
  0x26   :  { %p423_p4 = pnand %p421_p3, %p418_p2 }
  0x28   :  { %426 = shalt.err (!%p423_p4)
}
  0x29   :  { %s427_s26 = scalar_lea.vmem %s41_s17, 2048  ;;  %p432_p6 = scmp.lt.s32.totalorder %s41_s17, %s41_s17 }
  0x2a   :  { %p428_p5 = scmp.ne.s32.totalorder %s41_s17, %s427_s26  ;;  %p433_p7 = scmp.lt.s32.totalorder %s427_s26, %s427_s26 }
  0x2c   :  { %p434_p8 = por %p433_p7, %p432_p6 }
  0x2e   :  { %p435_p9 = pnand %p434_p8, %p428_p5 }
  0x30   :  { %438 = shalt.err (!%p435_p9)
}
  0x31   :  { %s470_s0 = smov 128   ;;  %s471_s21 = smov 8  }
  0x32   :  { %46 = dma.hbm_to_vmem [thread:$0]  %s563_s3, 2048, %s41_s17, [#allocation7], %s470_s0, %s470_s0, %s471_s21  }
  0x33   :  { %461 = dma.done.wait [#allocation4], 128  }
  0x34   :  { %462 = vsyncadd [#allocation4], 4294967168 }
  0x35   :  { %463 = dma.done.wait [#allocation7], 2176  }
  0x36   :  { %464 = vsyncadd [#allocation7], 4294965120  ;;  %v472_v0 = vmov 0.0   ;;  %vm473_vm0 = vmmov 0   ;;  %v474_v1 = vmov 0.0|0.0   ;;  %vm72_vm1 = vcmask 64512  }
  0x37   :  { %296 = vmatprep.subr.mxu0 %v472_v0  ;;  %298 = vmatprep.mubr.msk.f32.mxu0 %vm473_vm0, %v472_v0  ;;  %v64_v2 = vld [vmem:[#allocation6] sm:$0xff]  ;;  %v63_v3 = vld [vmem:[#allocation3] sm:$0xff]  ;;  %v152_v4 = vld [vmem:[#allocation8] sm:$0xff] }
  0x38   :  { %336 = vmatprep.subr.bf16.mxu1 %v474_v1  ;;  %333 = vmatprep.mubr.msk.f32.mxu1 %vm473_vm0, %v472_v0  ;;  %v153_v5 = vld [vmem:[#allocation8 + $0x8] sm:$0xff]  ;;  %v154_v6 = vld [vmem:[#allocation8 + $0x10] sm:$0xff]  ;;  %v155_v7 = vld [vmem:[#allocation8 + $0x18] sm:$0xff] }
  0x39   :  { %297 = vmatpush3.msra.mxu0 %v64_v2  ;;  %v337_v8 = vpack.c.bf16 %v153_v5, %v152_v4  ;;  %v340_v9 = vpack.c.bf16 %v155_v7, %v154_v6  ;;  %v156_v10 = vld [vmem:[#allocation8 + $0x20] sm:$0xff]  ;;  %v157_v11 = vld [vmem:[#allocation8 + $0x28] sm:$0xff]  ;;  %v158_v13 = vld [vmem:[#allocation8 + $0x30] sm:$0xff] }
  0x3a   :  { %299 = vmatmul.mubr.msk.f32.vlgmr.msra.gmra.mrb[0].mxu0 %vm72_vm1, %v63_v3  ;;  %v343_v12 = vpack.c.bf16 %v157_v11, %v156_v10  ;;  %v159_v14 = vld [vmem:[#allocation8 + $0x38] sm:$0xff]  ;;  %v160_v16 = vld [vmem:[#allocation8 + $0x40] sm:$0xff]  ;;  %v161_v17 = vld [vmem:[#allocation8 + $0x48] sm:$0xff] }
  0x3b   :  { %338 = vmatpush3.bf16.msra.mxu1 %v337_v8  ;;  %v346_v15 = vpack.c.bf16 %v159_v14, %v158_v13  ;;  %v349_v18 = vpack.c.bf16 %v161_v17, %v160_v16  ;;  %v162_v19 = vld [vmem:[#allocation8 + $0x50] sm:$0xff]  ;;  %v163_v20 = vld [vmem:[#allocation8 + $0x58] sm:$0xff]  ;;  %v164_v22 = vld [vmem:[#allocation8 + $0x60] sm:$0xff] }
  0x3c   :  { %339 = vmatprep.subr.bf16.mxu1 %v474_v1  ;;  %v352_v21 = vpack.c.bf16 %v163_v20, %v162_v19  ;;  %v165_v23 = vld [vmem:[#allocation8 + $0x68] sm:$0xff]  ;;  %v166_v25 = vld [vmem:[#allocation8 + $0x70] sm:$0xff]  ;;  %v167_v26 = vld [vmem:[#allocation8 + $0x78] sm:$0xff] }
  0x3d   :  { %v355_v24 = vpack.c.bf16 %v165_v23, %v164_v22  ;;  %v358_v27 = vpack.c.bf16 %v167_v26, %v166_v25  ;;  %v274_v28 = vld [vmem:[%s562_s2] ss:$0 sm:$0xff]  ;;  %s475_s2 = smov [#allocation9]  }
  0x3e   :  { %v276_v37 = vld [vmem:[%s564_s4] ss:$0 sm:$0xff]  ;;  %s264_s7 = sshll.u32 %s475_s2, 4  ;;  %s265_s7 = int_to_ptr.vmem [resolvable:$true] %s264_s7 }
  0x3f   :  { %341 = vmatpush3.bf16.msra.mxu1 %v340_v9  ;;  %s439_s8 = scalar_lea.vmem %s265_s7, 128  ;;  %p444_p11 = scmp.lt.s32.totalorder %s265_s7, %s265_s7 }
  0x40   :  { %342 = vmatprep.subr.bf16.mxu1 %v474_v1  ;;  %p440_p10 = scmp.ne.s32.totalorder %s265_s7, %s439_s8  ;;  %p445_p12 = scmp.lt.s32.totalorder %s439_s8, %s439_s8 }
  0x42   :  { %p446_p13 = por %p445_p12, %p444_p11 }
  0x43   :  { %344 = vmatpush3.bf16.msra.mxu1 %v343_v12 }
  0x44   :  { %345 = vmatprep.subr.bf16.mxu1 %v474_v1  ;;  %p447_p0 = pnand %p446_p13, %p440_p10 }
  0x47   :  { %347 = vmatpush3.bf16.msra.mxu1 %v346_v15 }
  0x48   :  { %348 = vmatprep.subr.bf16.mxu1 %v474_v1 }
  0x4b   :  { %350 = vmatpush3.bf16.msra.mxu1 %v349_v18 }
  0x4c   :  { %351 = vmatprep.subr.bf16.mxu1 %v474_v1 }
  0x4f   :  { %353 = vmatpush3.bf16.msra.mxu1 %v352_v21 }
  0x50   :  { %354 = vmatprep.subr.bf16.mxu1 %v474_v1 }
  0x53   :  { %356 = vmatpush3.bf16.msra.mxu1 %v355_v24 }
  0x54   :  { %357 = vmatprep.subr.bf16.mxu1 %v474_v1 }
  0x57   :  { %359 = vmatpush3.bf16.msra.mxu1 %v358_v27 }
 0x10d   :  { %v142_v29 = vpop.f32.mrb[0].mxu0 }
 0x10e   :  { %v143_v30 = vadd.f32 %v274_v28, %v142_v29  ;;  %v300_v31 = vpop.f32.mrb[1].mxu0 }
 0x110   :  { %v147_v32 = vmul.f32 0.70710677, %v143_v30  ;;  %v146_v34 = vmul.f32 0.5, %v143_v30 }
 0x112   :  { %369 = verf.f32 %v147_v32 }
 0x11c   :  { %v370_v33 = vpop.eup %369 }
 0x11d   :  { %v149_v35 = vadd.f32 1.0, %v370_v33 }
 0x11f   :  { %v150_v36 = vmul.f32 %v149_v35, %v146_v34 }
 0x121   :  { %334 = vmatmul.mubr.f32.vlgmr.msra.gmra.mrb[0].mxu1 %v150_v36 }
 0x1f4   :  { %v234_v38 = vpop.f32.mrb[0].mxu1 }
 0x1f5   :  { %v251_v39 = vadd.f32 %v276_v37, %v234_v38  ;;  %v335_v40 = vpop.f32.mrb[1].mxu1 }
 0x1f7   :  { %v253_v41 = vmul.f32 0.70710677, %v251_v39  ;;  %v252_v43 = vmul.f32 0.5, %v251_v39 }
 0x1f9   :  { %371 = verf.f32 %v253_v41 }
 0x203   :  { %v372_v42 = vpop.eup %371 }
 0x204   :  { %v255_v44 = vadd.f32 1.0, %v372_v42 }
 0x206   :  { %v256_v45 = vmul.f32 %v255_v44, %v252_v43 }
 0x208   :  { %257 = vst [vmem:[#allocation9] sm:$0xff] %v256_v45 }
 0x209   :  { %450 = shalt.err (!%p447_p0)
}
 0x20a   :  { %s451_s10 = scalar_lea.hbm %s565_s5, 128 }
 0x20b   :  { %p452_p1 = scmp.ne.s32.totalorder %s565_s5, %s451_s10  ;;  %p455_p2 = scmp.lt.u32.totalorder %s451_s10, %s565_s5 }
 0x20d   :  { %p457_p3 = pnand %p455_p2, %p452_p1 }
 0x20f   :  { %460 = shalt.err (!%p457_p3)
}
 0x210   :  { %267 = dma.vmem_to_hbm [thread:$0]  %s265_s7, 128, %s565_s5, [#allocation5]  }
 0x211   :  { %465 = dma.done.wait [#allocation5], 128  }
 0x212   :  { %466 = vsyncadd [#allocation5], 4294967168 }
 0x213   :  { %271 = vsyncpa [#allocation4], 1 }
 0x214   :  { %272 = vsyncpa [#allocation7], 1 }
 0x215   :  { %273 = vsyncpa [#allocation5], 1 }

</bundles_post_ra>
